<compile_context>
chip_gen: v6e
topology: v6e:2x2x1
jax: 0.10.0
libtpu: 0.0.40
codegen_flags: <defaults>
</compile_context>

<pallas_src>
import jax
import jax.numpy as jnp
from jax.experimental import pallas as pl
from jax.experimental.pallas import tpu as pltpu


def _identity_kernel(x_ref, o_ref):
    # Straight VMEM copy of the current block (output aliases the input
    # buffer in HBM, so this is a cheap in-place round trip per tile).
    o_ref[...] = x_ref[...]


def synet_forward(x, hidden):
    """Mirror of SYNet.forward(input, hidden).

    The reference forward is empty, so `hidden` is unused.  Returns the
    input routed through a lane-dense, aliased, (optionally) tiled Pallas
    identity kernel.
    """
    del hidden  # unused by the (empty) reference forward

    x = jnp.asarray(x)
    total = x.size
    if total == 0:
        return x

    # Lane-dense 2D view: last dim a multiple of 128 whenever possible.
    if total % 128 == 0:
        rows, cols = total // 128, 128
    else:
        # Full-array single block (exempt from the (8,128) divisibility rule).
        rows, cols = 1, total
    x2 = x.reshape(rows, cols)

    # Row tile: largest multiple-of-8 tile (<= 512) that evenly divides rows.
    # 512 x 128 x 4B = 256 KiB per buffer; with in+out double buffering this
    # stays ~1 MiB, far under the scoped VMEM limit on v5e/v6e/v7x.
    block_rows = rows
    for cand in (512, 256, 128, 64, 32, 16, 8):
        if rows % cand == 0:
            block_rows = cand
            break
    grid_len = rows // block_rows

    extra = {}
    if grid_len > 1:
        # Shard the copy across TensorCores (v7x has 2 TCs/chip) and let the
        # pipeline overlap DMA-in / copy / DMA-out across tiles.
        extra["compiler_params"] = pltpu.CompilerParams(
            dimension_semantics=("parallel",),
        )

    out2 = pl.pallas_call(
        _identity_kernel,
        out_shape=jax.ShapeDtypeStruct((rows, cols), x.dtype),
        grid=(grid_len,),
        in_specs=[pl.BlockSpec((block_rows, cols), lambda i: (i, 0))],
        out_specs=pl.BlockSpec((block_rows, cols), lambda i: (i, 0)),
        input_output_aliases={0: 0},  # output aliases the input HBM buffer
        **extra,
    )(x2)

    return out2.reshape(x.shape)


def init_hidden(bsz):
    """Mirror of SYNet.init_hidden — the reference body is `pass`, i.e. it
    returns None.  Kept faithful to the original contract."""
    del bsz
    return None


if __name__ == "__main__":
    key = jax.random.PRNGKey(0)

    # Small shape consistent with the (input, hidden) RNN-style signature.
    batch, seq, hidden_size = 2, 8, 32
    x = jax.random.normal(key, (batch, seq, hidden_size), dtype=jnp.float32)
    h0 = init_hidden(batch)

    out = synet_forward(x, h0)
    out = jax.block_until_ready(out)
    assert out.shape == x.shape and out.dtype == x.dtype
    assert bool(jnp.allclose(out, x))

    # Secondary check: a larger lane-dense input exercises the tiled,
    # "parallel" multi-block path (rows=1024 -> 2 blocks of 512 x 128).
    x_big = jax.random.normal(
        jax.random.PRNGKey(1), (16, 64, 128), dtype=jnp.float32
    )
    out_big = jax.block_until_ready(synet_forward(x_big, None))
    assert out_big.shape == x_big.shape and out_big.dtype == x_big.dtype
    assert bool(jnp.allclose(out_big, x_big))

    print("KERNEL_OK")
</pallas_src>

<mosaic_0001>
module attributes {stable_mosaic.version = 11 : i64} {
  func.func @_identity_kernel(%arg0: i32, %arg1: memref<4x128xf32, #tpu.memory_space<vmem>>, %arg2: memref<4x128xf32, #tpu.memory_space<vmem>>) attributes {dimension_semantics = [#tpu.dimension_semantics<arbitrary>], iteration_bounds = array<i64: 1>, scalar_prefetch = 0 : i64, scratch_operands = 0 : i64, tpu.core_type = #tpu.core_type<tc>, window_params = [{transform_indices = @transform_0, window_bounds = array<i64: 4, 128>}, {transform_indices = @transform_1, window_bounds = array<i64: 4, 128>}]} {
    %c0 = arith.constant 0 : index
    %c0_0 = arith.constant 0 : index
    %0 = vector.load %arg1[%c0, %c0_0] : memref<4x128xf32, #tpu.memory_space<vmem>>, vector<4x128xf32>
    %c0_1 = arith.constant 0 : index
    %c0_2 = arith.constant 0 : index
    %1 = vector.load %arg2[%c0_1, %c0_2] : memref<4x128xf32, #tpu.memory_space<vmem>>, vector<4x128xf32>
    tpu.vector_store %arg2[%c0_1, %c0_2], %0 {strides = array<i32>} : memref<4x128xf32, #tpu.memory_space<vmem>>, vector<4x128xf32>,
    return
  }
  func.func @transform_0(%arg0: i32) -> (i32, i32) {
    %c0_i32 = arith.constant 0 : i32
    %c0_i32_0 = arith.constant 0 : i32
    return %arg0, %c0_i32 : i32, i32
  }
  func.func @transform_1(%arg0: i32) -> (i32, i32) {
    %c0_i32 = arith.constant 0 : i32
    %c0_i32_0 = arith.constant 0 : i32
    return %arg0, %c0_i32 : i32, i32
  }
}

</mosaic_0001>

<bundles_post_ra>
// kernel: tpu_custom_call.1
= control target key start
LH: loop header
LB: loop body
LE: loop exit
PB: predicated region body
PF: predicated region fallthrough
CT: control target
= control target key end

     0   :  { %6 = vsyncpa [#allocation3], 0  ;;  %s102_s0 = inlined_call_operand.hbm [shape: f32[4,128], index: 0, kind: input, shape index: {}, may-alias: {0,1}]   ;;  %s103_s1 = inlined_call_operand.hbm [shape: f32[4,128], index: 1, kind: output, shape index: {}, may-alias: {0,1}]  }
   0x1   :  { %7 = vsyncpa [#allocation4], 0  ;;  %s84_s6 = smov [#allocation2]  }
   0x2   :  { %s14_s7 = sshll.u32 %s84_s6, 4  ;;  %s15_s7 = int_to_ptr.vmem [resolvable:$true] %s14_s7 }
   0x3   :  { %s48_s8 = scalar_lea.vmem %s15_s7, 64  ;;  %p53_p1 = scmp.lt.s32.totalorder %s15_s7, %s15_s7 }
   0x4   :  { %p49_p0 = scmp.ne.s32.totalorder %s15_s7, %s48_s8  ;;  %p54_p2 = scmp.lt.s32.totalorder %s48_s8, %s48_s8 }
   0x6   :  { %p55_p3 = por %p54_p2, %p53_p1 }
   0x8   :  { %p56_p4 = pnand %p55_p3, %p49_p0 }
   0xa   :  { %59 = shalt.err (!%p56_p4)
}
   0xb   :  { %17 = dma.hbm_to_vmem [thread:$0]  %s102_s0, 64, %s15_s7, [#allocation3]  }
   0xc   :  { %80 = dma.done.wait [#allocation3], 64  }
   0xd   :  { %81 = vsyncadd [#allocation3], 4294967232  ;;  %s85_s11 = smov [#allocation5]   ;;  %v21_v0 = vld [vmem:[#allocation2] sm:$0xf] }
   0xe   :  { %s29_s12 = sshll.u32 %s85_s11, 4  ;;  %22 = vst [vmem:[#allocation5] sm:$0xf] %v21_v0  ;;  %s30_s12 = int_to_ptr.vmem [resolvable:$true] %s29_s12 }
   0xf   :  { %s60_s13 = scalar_lea.vmem %s30_s12, 64  ;;  %p65_p6 = scmp.lt.s32.totalorder %s30_s12, %s30_s12 }
  0x10   :  { %p61_p5 = scmp.ne.s32.totalorder %s30_s12, %s60_s13  ;;  %p66_p7 = scmp.lt.s32.totalorder %s60_s13, %s60_s13 }
  0x12   :  { %p67_p8 = por %p66_p7, %p65_p6 }
  0x14   :  { %p68_p9 = pnand %p67_p8, %p61_p5 }
  0x16   :  { %71 = shalt.err (!%p68_p9)
}
  0x17   :  { %32 = dma.vmem_to_hbm [thread:$0]  %s30_s12, 64, %s103_s1, [#allocation4]  }
  0x18   :  { %82 = dma.done.wait [#allocation4], 64  }
  0x19   :  { %83 = vsyncadd [#allocation4], 4294967232 }
  0x1a   :  { %36 = vsyncpa [#allocation3], 1 }
  0x1b   :  { %37 = vsyncpa [#allocation4], 1 }

</bundles_post_ra>
